<compile_context>
chip_gen: v7x
topology: tpu7x:2x2x1
jax: 0.10.0
libtpu: 0.0.40
codegen_flags: <defaults>
</compile_context>

<pallas_src>
import math

import jax
import jax.numpy as jnp
import numpy as np
from jax import lax
from jax.experimental import pallas as pl
from jax.experimental.pallas import tpu as pltpu

# ---------------- config (small, consistent with the module) ----------------
HIDDEN = 32                      # config.hidden_size
N_HEADS = 4                      # config.num_attention_heads
N_KV_HEADS = 2                   # config.num_key_value_heads (GQA, ratio 2)
HEAD_DIM = HIDDEN // N_HEADS     # 8
GQA_RATIO = N_HEADS // N_KV_HEADS
WORLD_SIZE = 1                   # dist.get_world_size() -> all_reduce identity
B = 2                            # batch
T = 8                            # seq_len
ROPE_THETA = 10000.0
# eval mode -> dropout_p = 0.0 in scaled_dot_product_attention

Q_OUT = N_HEADS * HEAD_DIM       # 32
KV_OUT = N_KV_HEADS * HEAD_DIM   # 16
QKV_OUT = Q_OUT + 2 * KV_OUT     # 64


# ------------------------ single fused Pallas kernel -------------------------
def _fused_attn_kernel(x_ref, wqkv_ref, wo_ref, cos_ref, sin_ref, o_ref):
    """Entire TPLlamaAttention forward on VMEM-resident blocks.

    x:       (B, T, HIDDEN)
    wqkv:    (HIDDEN, QKV_OUT)  -- [Wq | Wk | Wv] pre-transposed at init
    wo:      (Q_OUT, HIDDEN)    -- Wo pre-transposed at init
    cos/sin: (T, HEAD_DIM)
    o:       (B, T, HIDDEN)
    """
    x = x_ref[...].reshape(B * T, HIDDEN)                               # (16, 32)

    # --- fused Q/K/V projection: one MXU matmul instead of three ---
    qkv = jnp.dot(x, wqkv_ref[...], preferred_element_type=jnp.float32)  # (16, 64)
    q_flat = qkv[:, :Q_OUT]                                             # (16, 32)
    k_flat = qkv[:, Q_OUT:Q_OUT + KV_OUT]                               # (16, 16)
    v_flat = qkv[:, Q_OUT + KV_OUT:]                                    # (16, 16)

    # Gather per-head (B, T, hd) blocks, batched along one leading axis.
    def head_block(flat, h):
        return flat[:, h * HEAD_DIM:(h + 1) * HEAD_DIM].reshape(B, T, HEAD_DIM)

    q_all = jnp.concatenate(
        [head_block(q_flat, h) for h in range(N_HEADS)], axis=0)        # (nH*B, T, hd)
    k_kv = jnp.concatenate(
        [head_block(k_flat, g) for g in range(N_KV_HEADS)], axis=0)     # (nKV*B, T, hd)
    v_kv = jnp.concatenate(
        [head_block(v_flat, g) for g in range(N_KV_HEADS)], axis=0)

    # --- RoPE (cos/sin broadcast in-kernel; applied once per kv head) ---
    cos = cos_ref[...][None]       # (1, T, hd)
    sin = sin_ref[...][None]
    half = HEAD_DIM // 2

    def rope(t):
        # rotate_half(t) = concat(-t2, t1) within each head_dim block
        rot = jnp.concatenate([-t[..., half:], t[..., :half]], axis=-1)
        return t * cos + rot * sin

    q_all = rope(q_all)
    k_kv = rope(k_kv)

    # --- GQA: replicate roped kv heads so one batched einsum covers all heads ---
    k_rep = jnp.concatenate(
        [k_kv[(h // GQA_RATIO) * B:(h // GQA_RATIO + 1) * B] for h in range(N_HEADS)],
        axis=0)                                                         # (nH*B, T, hd)
    v_rep = jnp.concatenate(
        [v_kv[(h // GQA_RATIO) * B:(h // GQA_RATIO + 1) * B] for h in range(N_HEADS)],
        axis=0)

    # --- attention: one batched score einsum + one batched PV einsum ---
    scale = 1.0 / math.sqrt(HEAD_DIM)
    s = jnp.einsum('nqd,nkd->nqk', q_all, k_rep,
                   preferred_element_type=jnp.float32) * scale          # (nH*B, T, T)

    row = lax.broadcasted_iota(jnp.int32, s.shape, 1)
    col = lax.broadcasted_iota(jnp.int32, s.shape, 2)
    s = jnp.where(row >= col, s, -1e30)                                 # causal mask

    m = jnp.max(s, axis=-1, keepdims=True)
    p = jnp.exp(s - m)
    denom = jnp.sum(p, axis=-1, keepdims=True)
    o = jnp.einsum('nqk,nkd->nqd', p, v_rep,
                   preferred_element_type=jnp.float32) / denom          # (nH*B, T, hd)

    # --- reassemble a lane-dense (B*T, nH*hd) slab, then output projection ---
    rows = []
    for b in range(B):
        rows.append(jnp.concatenate(
            [o[h * B + b] for h in range(N_HEADS)], axis=-1))           # (T, nH*hd)
    attn = jnp.concatenate(rows, axis=0)                                # (16, 32)

    out = jnp.dot(attn, wo_ref[...], preferred_element_type=jnp.float32)  # (16, 32)
    o_ref[...] = out.reshape(B, T, HIDDEN)
    # TODO(synk): dist.all_reduce(SUM) across TP ranks — world_size=1 here, identity.


# ------------------------------ module forward -------------------------------
def prepare_weights(wq, wk, wv, wo):
    """One-time init-side prep: fuse QKV into one weight and pre-transpose to
    (in_features, out_features) so the kernel does no per-call transpose."""
    wqkv_t = jnp.concatenate([wq, wk, wv], axis=0).T   # (HIDDEN, QKV_OUT)
    wo_t = wo.T                                        # (Q_OUT, HIDDEN)
    return wqkv_t, wo_t


def tp_llama_attention_forward(hidden_states, wqkv_t, wo_t, cos, sin):
    """Pallas implementation of TPLlamaAttention.forward (eval, no KV cache)."""
    Bx, Tx, H = hidden_states.shape
    return pl.pallas_call(
        _fused_attn_kernel,
        out_shape=jax.ShapeDtypeStruct((Bx, Tx, H), jnp.float32),
        grid=(1,),
        in_specs=[
            pl.BlockSpec((Bx, Tx, H), lambda i: (0, 0, 0)),
            pl.BlockSpec(wqkv_t.shape, lambda i: (0, 0)),
            pl.BlockSpec(wo_t.shape, lambda i: (0, 0)),
            pl.BlockSpec(cos.shape, lambda i: (0, 0)),
            pl.BlockSpec(sin.shape, lambda i: (0, 0)),
        ],
        out_specs=pl.BlockSpec((Bx, Tx, H), lambda i: (0, 0, 0)),
        compiler_params=pltpu.CompilerParams(
            dimension_semantics=("arbitrary",)),
    )(hidden_states, wqkv_t, wo_t, cos, sin)


# --------------------------- pure-JAX reference ------------------------------
def _rotate_half(x):
    half = x.shape[-1] // 2
    return jnp.concatenate([-x[..., half:], x[..., :half]], axis=-1)


def reference_forward(hidden_states, wq, wk, wv, wo, cos, sin):
    Bx, Tx, H = hidden_states.shape
    q = hidden_states @ wq.T
    k = hidden_states @ wk.T
    v = hidden_states @ wv.T
    q = q.reshape(Bx, Tx, N_HEADS, HEAD_DIM).transpose(0, 2, 1, 3)
    k = k.reshape(Bx, Tx, N_KV_HEADS, HEAD_DIM).transpose(0, 2, 1, 3)
    v = v.reshape(Bx, Tx, N_KV_HEADS, HEAD_DIM).transpose(0, 2, 1, 3)
    cos_b = cos[:, None, :, :]
    sin_b = sin[:, None, :, :]
    q = q * cos_b + _rotate_half(q) * sin_b
    k = k * cos_b + _rotate_half(k) * sin_b
    # GQA: repeat kv heads
    k = jnp.repeat(k, GQA_RATIO, axis=1)
    v = jnp.repeat(v, GQA_RATIO, axis=1)
    scale = 1.0 / math.sqrt(HEAD_DIM)
    s = jnp.einsum("bhqd,bhkd->bhqk", q, k) * scale
    causal = jnp.tril(jnp.ones((Tx, Tx), dtype=bool))
    s = jnp.where(causal[None, None], s, -jnp.inf)
    p = jax.nn.softmax(s, axis=-1)
    o = jnp.einsum("bhqk,bhkd->bhqd", p, v)
    o = o.transpose(0, 2, 1, 3).reshape(Bx, Tx, N_HEADS * HEAD_DIM)
    return o @ wo.T


# ---------------------------------- main -------------------------------------
if __name__ == "__main__":
    key = jax.random.PRNGKey(0)
    k_x, k_q, k_k, k_v, k_o = jax.random.split(key, 5)

    hidden_states = jax.random.normal(k_x, (B, T, HIDDEN), dtype=jnp.float32)

    # nn.Linear weight shapes: (out_features, in_features); attention_bias=False
    wq = jax.random.normal(k_q, (N_HEADS * HEAD_DIM, HIDDEN), dtype=jnp.float32) * 0.05
    wk = jax.random.normal(k_k, (N_KV_HEADS * HEAD_DIM, HIDDEN), dtype=jnp.float32) * 0.05
    wv = jax.random.normal(k_v, (N_KV_HEADS * HEAD_DIM, HIDDEN), dtype=jnp.float32) * 0.05
    wo = jax.random.normal(k_o, (HIDDEN, N_HEADS * HEAD_DIM), dtype=jnp.float32) * 0.05

    # position_embeddings = (cos, sin), standard RoPE; kernel takes (T, HEAD_DIM)
    inv_freq = 1.0 / (ROPE_THETA ** (jnp.arange(0, HEAD_DIM, 2, dtype=jnp.float32) / HEAD_DIM))
    positions = jnp.arange(T, dtype=jnp.float32)
    freqs = jnp.einsum("t,d->td", positions, inv_freq)          # (T, HEAD_DIM/2)
    emb = jnp.concatenate([freqs, freqs], axis=-1)              # (T, HEAD_DIM)
    cos_thd = jnp.cos(emb)
    sin_thd = jnp.sin(emb)

    # One-time init-side weight prep (fused QKV + pre-transpose).
    wqkv_t, wo_t = prepare_weights(wq, wk, wv, wo)

    out = tp_llama_attention_forward(hidden_states, wqkv_t, wo_t, cos_thd, sin_thd)
    out = jax.block_until_ready(out)

    cos_b = jnp.broadcast_to(cos_thd[None], (B, T, HEAD_DIM))
    sin_b = jnp.broadcast_to(sin_thd[None], (B, T, HEAD_DIM))
    ref = reference_forward(hidden_states, wq, wk, wv, wo, cos_b, sin_b)
    np.testing.assert_allclose(np.asarray(out), np.asarray(ref), rtol=1e-4, atol=1e-4)

    print("KERNEL_OK")
</pallas_src>

<mosaic_0001>
module attributes {stable_mosaic.version = 11 : i64} {
  func.func @_fused_attn_kernel(%arg0: i32, %arg1: memref<2x8x32xf32, #tpu.memory_space<vmem>>, %arg2: memref<32x64xf32, #tpu.memory_space<vmem>>, %arg3: memref<32x32xf32, #tpu.memory_space<vmem>>, %arg4: memref<8x8xf32, #tpu.memory_space<vmem>>, %arg5: memref<8x8xf32, #tpu.memory_space<vmem>>, %arg6: memref<2x8x32xf32, #tpu.memory_space<vmem>>) attributes {dimension_semantics = [#tpu.dimension_semantics<arbitrary>], iteration_bounds = array<i64: 1>, scalar_prefetch = 0 : i64, scratch_operands = 0 : i64, tpu.core_type = #tpu.core_type<tc>, window_params = [{pipeline_mode = #tpu.pipeline_mode<synchronous>, transform_indices = @transform_0, window_bounds = array<i64: 2, 8, 32>}, {pipeline_mode = #tpu.pipeline_mode<synchronous>, transform_indices = @transform_1, window_bounds = array<i64: 32, 64>}, {pipeline_mode = #tpu.pipeline_mode<synchronous>, transform_indices = @transform_2, window_bounds = array<i64: 32, 32>}, {pipeline_mode = #tpu.pipeline_mode<synchronous>, transform_indices = @transform_3, window_bounds = array<i64: 8, 8>}, {pipeline_mode = #tpu.pipeline_mode<synchronous>, transform_indices = @transform_4, window_bounds = array<i64: 8, 8>}, {pipeline_mode = #tpu.pipeline_mode<synchronous>, transform_indices = @transform_5, window_bounds = array<i64: 2, 8, 32>}]} {
    %c0 = arith.constant 0 : index
    %c0_0 = arith.constant 0 : index
    %c0_1 = arith.constant 0 : index
    %0 = vector.load %arg1[%c0, %c0_0, %c0_1] : memref<2x8x32xf32, #tpu.memory_space<vmem>>, vector<2x8x32xf32>
    %1 = vector.shape_cast %0 : vector<2x8x32xf32> to vector<16x32xf32>
    %c0_2 = arith.constant 0 : index
    %c0_3 = arith.constant 0 : index
    %2 = vector.load %arg2[%c0_2, %c0_3] : memref<32x64xf32, #tpu.memory_space<vmem>>, vector<32x64xf32>
    %cst = arith.constant dense<0.000000e+00> : vector<16x64xf32>
    %3 = tpu.matmul %1, %2, %cst {dimension_numbers = #tpu.dot_dimension_numbers<[1], [0], [0], [1], [0, 0, 1, 1], [], []>} : vector<16x32xf32>, vector<32x64xf32>, vector<16x64xf32> -> vector<16x64xf32>
    %4 = vector.extract_strided_slice %3 {offsets = [0, 0], sizes = [16, 32], strides = [1, 1]} : vector<16x64xf32> to vector<16x32xf32>
    %5 = vector.extract_strided_slice %3 {offsets = [0, 32], sizes = [16, 16], strides = [1, 1]} : vector<16x64xf32> to vector<16x16xf32>
    %6 = vector.extract_strided_slice %3 {offsets = [0, 48], sizes = [16, 16], strides = [1, 1]} : vector<16x64xf32> to vector<16x16xf32>
    %7 = vector.extract_strided_slice %4 {offsets = [0, 0], sizes = [16, 8], strides = [1, 1]} : vector<16x32xf32> to vector<16x8xf32>
    %8 = vector.shape_cast %7 : vector<16x8xf32> to vector<2x8x8xf32>
    %9 = vector.extract_strided_slice %4 {offsets = [0, 8], sizes = [16, 8], strides = [1, 1]} : vector<16x32xf32> to vector<16x8xf32>
    %10 = vector.shape_cast %9 : vector<16x8xf32> to vector<2x8x8xf32>
    %11 = vector.extract_strided_slice %4 {offsets = [0, 16], sizes = [16, 8], strides = [1, 1]} : vector<16x32xf32> to vector<16x8xf32>
    %12 = vector.shape_cast %11 : vector<16x8xf32> to vector<2x8x8xf32>
    %13 = vector.extract_strided_slice %4 {offsets = [0, 24], sizes = [16, 8], strides = [1, 1]} : vector<16x32xf32> to vector<16x8xf32>
    %14 = vector.shape_cast %13 : vector<16x8xf32> to vector<2x8x8xf32>
    %15 = tpu.concatenate %8, %10, %12, %14 in 0 : vector<2x8x8xf32>, vector<2x8x8xf32>, vector<2x8x8xf32>, vector<2x8x8xf32> -> vector<8x8x8xf32>
    %16 = vector.extract_strided_slice %5 {offsets = [0, 0], sizes = [16, 8], strides = [1, 1]} : vector<16x16xf32> to vector<16x8xf32>
    %17 = vector.shape_cast %16 : vector<16x8xf32> to vector<2x8x8xf32>
    %18 = vector.extract_strided_slice %5 {offsets = [0, 8], sizes = [16, 8], strides = [1, 1]} : vector<16x16xf32> to vector<16x8xf32>
    %19 = vector.shape_cast %18 : vector<16x8xf32> to vector<2x8x8xf32>
    %20 = tpu.concatenate %17, %19 in 0 : vector<2x8x8xf32>, vector<2x8x8xf32> -> vector<4x8x8xf32>
    %21 = vector.extract_strided_slice %6 {offsets = [0, 0], sizes = [16, 8], strides = [1, 1]} : vector<16x16xf32> to vector<16x8xf32>
    %22 = vector.shape_cast %21 : vector<16x8xf32> to vector<2x8x8xf32>
    %23 = vector.extract_strided_slice %6 {offsets = [0, 8], sizes = [16, 8], strides = [1, 1]} : vector<16x16xf32> to vector<16x8xf32>
    %24 = vector.shape_cast %23 : vector<16x8xf32> to vector<2x8x8xf32>
    %25 = tpu.concatenate %22, %24 in 0 : vector<2x8x8xf32>, vector<2x8x8xf32> -> vector<4x8x8xf32>
    %c0_4 = arith.constant 0 : index
    %c0_5 = arith.constant 0 : index
    %26 = vector.load %arg4[%c0_4, %c0_5] : memref<8x8xf32, #tpu.memory_space<vmem>>, vector<8x8xf32>
    %27 = vector.shape_cast %26 : vector<8x8xf32> to vector<1x8x8xf32>
    %c0_6 = arith.constant 0 : index
    %c0_7 = arith.constant 0 : index
    %28 = vector.load %arg5[%c0_6, %c0_7] : memref<8x8xf32, #tpu.memory_space<vmem>>, vector<8x8xf32>
    %29 = vector.shape_cast %28 : vector<8x8xf32> to vector<1x8x8xf32>
    %30 = vector.extract_strided_slice %15 {offsets = [0, 0, 4], sizes = [8, 8, 4], strides = [1, 1, 1]} : vector<8x8x8xf32> to vector<8x8x4xf32>
    %cst_8 = arith.constant 0.000000e+00 : f32
    %31 = vector.broadcast %cst_8 : f32 to vector<8x8x4xf32>
    %32 = arith.subf %31, %30 : vector<8x8x4xf32>
    %33 = vector.extract_strided_slice %15 {offsets = [0, 0, 0], sizes = [8, 8, 4], strides = [1, 1, 1]} : vector<8x8x8xf32> to vector<8x8x4xf32>
    %34 = tpu.concatenate %32, %33 in 2 : vector<8x8x4xf32>, vector<8x8x4xf32> -> vector<8x8x8xf32>
    %35 = vector.broadcast %27 : vector<1x8x8xf32> to vector<8x8x8xf32>
    %36 = arith.mulf %15, %35 : vector<8x8x8xf32>
    %37 = vector.broadcast %29 : vector<1x8x8xf32> to vector<8x8x8xf32>
    %38 = arith.mulf %34, %37 : vector<8x8x8xf32>
    %39 = arith.addf %36, %38 : vector<8x8x8xf32>
    %40 = vector.extract_strided_slice %20 {offsets = [0, 0, 4], sizes = [4, 8, 4], strides = [1, 1, 1]} : vector<4x8x8xf32> to vector<4x8x4xf32>
    %cst_9 = arith.constant 0.000000e+00 : f32
    %41 = vector.broadcast %cst_9 : f32 to vector<4x8x4xf32>
    %42 = arith.subf %41, %40 : vector<4x8x4xf32>
    %43 = vector.extract_strided_slice %20 {offsets = [0, 0, 0], sizes = [4, 8, 4], strides = [1, 1, 1]} : vector<4x8x8xf32> to vector<4x8x4xf32>
    %44 = tpu.concatenate %42, %43 in 2 : vector<4x8x4xf32>, vector<4x8x4xf32> -> vector<4x8x8xf32>
    %45 = vector.broadcast %27 : vector<1x8x8xf32> to vector<4x8x8xf32>
    %46 = arith.mulf %20, %45 : vector<4x8x8xf32>
    %47 = vector.broadcast %29 : vector<1x8x8xf32> to vector<4x8x8xf32>
    %48 = arith.mulf %44, %47 : vector<4x8x8xf32>
    %49 = arith.addf %46, %48 : vector<4x8x8xf32>
    %50 = vector.extract_strided_slice %49 {offsets = [0, 0, 0], sizes = [2, 8, 8], strides = [1, 1, 1]} : vector<4x8x8xf32> to vector<2x8x8xf32>
    %51 = vector.extract_strided_slice %49 {offsets = [0, 0, 0], sizes = [2, 8, 8], strides = [1, 1, 1]} : vector<4x8x8xf32> to vector<2x8x8xf32>
    %52 = vector.extract_strided_slice %49 {offsets = [2, 0, 0], sizes = [2, 8, 8], strides = [1, 1, 1]} : vector<4x8x8xf32> to vector<2x8x8xf32>
    %53 = vector.extract_strided_slice %49 {offsets = [2, 0, 0], sizes = [2, 8, 8], strides = [1, 1, 1]} : vector<4x8x8xf32> to vector<2x8x8xf32>
    %54 = tpu.concatenate %50, %51, %52, %53 in 0 : vector<2x8x8xf32>, vector<2x8x8xf32>, vector<2x8x8xf32>, vector<2x8x8xf32> -> vector<8x8x8xf32>
    %55 = vector.extract_strided_slice %25 {offsets = [0, 0, 0], sizes = [2, 8, 8], strides = [1, 1, 1]} : vector<4x8x8xf32> to vector<2x8x8xf32>
    %56 = vector.extract_strided_slice %25 {offsets = [0, 0, 0], sizes = [2, 8, 8], strides = [1, 1, 1]} : vector<4x8x8xf32> to vector<2x8x8xf32>
    %57 = vector.extract_strided_slice %25 {offsets = [2, 0, 0], sizes = [2, 8, 8], strides = [1, 1, 1]} : vector<4x8x8xf32> to vector<2x8x8xf32>
    %58 = vector.extract_strided_slice %25 {offsets = [2, 0, 0], sizes = [2, 8, 8], strides = [1, 1, 1]} : vector<4x8x8xf32> to vector<2x8x8xf32>
    %59 = tpu.concatenate %55, %56, %57, %58 in 0 : vector<2x8x8xf32>, vector<2x8x8xf32>, vector<2x8x8xf32>, vector<2x8x8xf32> -> vector<8x8x8xf32>
    "tpu.trace_start"() <{level = 10 : i32, message = "nqd,nkd->nqk"}> : () -> ()
    %cst_10 = arith.constant dense<0.000000e+00> : vector<8x8x8xf32>
    %60 = tpu.matmul %39, %54, %cst_10 {dimension_numbers = #tpu.dot_dimension_numbers<[2], [2], [1], [1], [0, 0, 0, 1, 1, 1], [0], [0]>} : vector<8x8x8xf32>, vector<8x8x8xf32>, vector<8x8x8xf32> -> vector<8x8x8xf32>
    "tpu.trace_stop"() : () -> ()
    %cst_11 = arith.constant 0.353553385 : f32
    %61 = vector.broadcast %cst_11 : f32 to vector<8x8x8xf32>
    %62 = arith.mulf %60, %61 : vector<8x8x8xf32>
    %63 = tpu.iota {dimensions = array<i32: 1>} : vector<8x8x8xi32>
    %64 = tpu.iota {dimensions = array<i32: 2>} : vector<8x8x8xi32>
    %65 = arith.cmpi sge, %63, %64 : vector<8x8x8xi32>
    %cst_12 = arith.constant -1.000000e+30 : f32
    %66 = vector.broadcast %cst_12 : f32 to vector<8x8x8xf32>
    %67 = arith.select %65, %62, %66 : vector<8x8x8xi1>, vector<8x8x8xf32>
    %cst_13 = arith.constant dense<0xFF800000> : vector<8x8xf32>
    %68 = vector.multi_reduction <maximumf>, %67, %cst_13 [2] : vector<8x8x8xf32> to vector<8x8xf32>
    %69 = vector.shape_cast %68 : vector<8x8xf32> to vector<8x8x1xf32>
    %70 = vector.broadcast %69 : vector<8x8x1xf32> to vector<8x8x8xf32>
    %71 = arith.subf %67, %70 : vector<8x8x8xf32>
    %72 = math.exp %71 : vector<8x8x8xf32>
    %cst_14 = arith.constant dense<0.000000e+00> : vector<8x8xf32>
    %73 = vector.multi_reduction <add>, %72, %cst_14 [2] : vector<8x8x8xf32> to vector<8x8xf32>
    %74 = vector.shape_cast %73 : vector<8x8xf32> to vector<8x8x1xf32>
    "tpu.trace_start"() <{level = 10 : i32, message = "nqk,nkd->nqd"}> : () -> ()
    %cst_15 = arith.constant dense<0.000000e+00> : vector<8x8x8xf32>
    %75 = tpu.matmul %72, %59, %cst_15 {dimension_numbers = #tpu.dot_dimension_numbers<[2], [1], [1], [2], [0, 0, 0, 1, 1, 2], [0], [0]>} : vector<8x8x8xf32>, vector<8x8x8xf32>, vector<8x8x8xf32> -> vector<8x8x8xf32>
    "tpu.trace_stop"() : () -> ()
    %76 = vector.broadcast %74 : vector<8x8x1xf32> to vector<8x8x8xf32>
    %77 = arith.divf %75, %76 : vector<8x8x8xf32>
    %78 = vector.extract_strided_slice %77 {offsets = [0, 0, 0], sizes = [1, 8, 8], strides = [1, 1, 1]} : vector<8x8x8xf32> to vector<1x8x8xf32>
    %79 = vector.shape_cast %78 : vector<1x8x8xf32> to vector<8x8xf32>
    %80 = vector.extract_strided_slice %77 {offsets = [2, 0, 0], sizes = [1, 8, 8], strides = [1, 1, 1]} : vector<8x8x8xf32> to vector<1x8x8xf32>
    %81 = vector.shape_cast %80 : vector<1x8x8xf32> to vector<8x8xf32>
    %82 = vector.extract_strided_slice %77 {offsets = [4, 0, 0], sizes = [1, 8, 8], strides = [1, 1, 1]} : vector<8x8x8xf32> to vector<1x8x8xf32>
    %83 = vector.shape_cast %82 : vector<1x8x8xf32> to vector<8x8xf32>
    %84 = vector.extract_strided_slice %77 {offsets = [6, 0, 0], sizes = [1, 8, 8], strides = [1, 1, 1]} : vector<8x8x8xf32> to vector<1x8x8xf32>
    %85 = vector.shape_cast %84 : vector<1x8x8xf32> to vector<8x8xf32>
    %86 = tpu.concatenate %79, %81, %83, %85 in 1 : vector<8x8xf32>, vector<8x8xf32>, vector<8x8xf32>, vector<8x8xf32> -> vector<8x32xf32>
    %87 = vector.extract_strided_slice %77 {offsets = [1, 0, 0], sizes = [1, 8, 8], strides = [1, 1, 1]} : vector<8x8x8xf32> to vector<1x8x8xf32>
    %88 = vector.shape_cast %87 : vector<1x8x8xf32> to vector<8x8xf32>
    %89 = vector.extract_strided_slice %77 {offsets = [3, 0, 0], sizes = [1, 8, 8], strides = [1, 1, 1]} : vector<8x8x8xf32> to vector<1x8x8xf32>
    %90 = vector.shape_cast %89 : vector<1x8x8xf32> to vector<8x8xf32>
    %91 = vector.extract_strided_slice %77 {offsets = [5, 0, 0], sizes = [1, 8, 8], strides = [1, 1, 1]} : vector<8x8x8xf32> to vector<1x8x8xf32>
    %92 = vector.shape_cast %91 : vector<1x8x8xf32> to vector<8x8xf32>
    %93 = vector.extract_strided_slice %77 {offsets = [7, 0, 0], sizes = [1, 8, 8], strides = [1, 1, 1]} : vector<8x8x8xf32> to vector<1x8x8xf32>
    %94 = vector.shape_cast %93 : vector<1x8x8xf32> to vector<8x8xf32>
    %95 = tpu.concatenate %88, %90, %92, %94 in 1 : vector<8x8xf32>, vector<8x8xf32>, vector<8x8xf32>, vector<8x8xf32> -> vector<8x32xf32>
    %96 = tpu.concatenate %86, %95 in 0 : vector<8x32xf32>, vector<8x32xf32> -> vector<16x32xf32>
    %c0_16 = arith.constant 0 : index
    %c0_17 = arith.constant 0 : index
    %97 = vector.load %arg3[%c0_16, %c0_17] : memref<32x32xf32, #tpu.memory_space<vmem>>, vector<32x32xf32>
    %cst_18 = arith.constant dense<0.000000e+00> : vector<16x32xf32>
    %98 = tpu.matmul %96, %97, %cst_18 {dimension_numbers = #tpu.dot_dimension_numbers<[1], [0], [0], [1], [0, 0, 1, 1], [], []>} : vector<16x32xf32>, vector<32x32xf32>, vector<16x32xf32> -> vector<16x32xf32>
    %99 = vector.shape_cast %98 : vector<16x32xf32> to vector<2x8x32xf32>
    %c0_19 = arith.constant 0 : index
    %c0_20 = arith.constant 0 : index
    %c0_21 = arith.constant 0 : index
    %100 = vector.load %arg6[%c0_19, %c0_20, %c0_21] : memref<2x8x32xf32, #tpu.memory_space<vmem>>, vector<2x8x32xf32>
    tpu.vector_store %arg6[%c0_19, %c0_20, %c0_21], %99 {strides = array<i32>} : memref<2x8x32xf32, #tpu.memory_space<vmem>>, vector<2x8x32xf32>,
    return
  }
  func.func @transform_0(%arg0: i32) -> (i32, i32, i32) {
    %c0_i32 = arith.constant 0 : i32
    %c0_i32_0 = arith.constant 0 : i32
    %c0_i32_1 = arith.constant 0 : i32
    %c0_i32_2 = arith.constant 0 : i32
    return %c0_i32, %c0_i32_0, %c0_i32_1 : i32, i32, i32
  }
  func.func @transform_1(%arg0: i32) -> (i32, i32) {
    %c0_i32 = arith.constant 0 : i32
    %c0_i32_0 = arith.constant 0 : i32
    %c0_i32_1 = arith.constant 0 : i32
    return %c0_i32, %c0_i32_0 : i32, i32
  }
  func.func @transform_2(%arg0: i32) -> (i32, i32) {
    %c0_i32 = arith.constant 0 : i32
    %c0_i32_0 = arith.constant 0 : i32
    %c0_i32_1 = arith.constant 0 : i32
    return %c0_i32, %c0_i32_0 : i32, i32
  }
  func.func @transform_3(%arg0: i32) -> (i32, i32) {
    %c0_i32 = arith.constant 0 : i32
    %c0_i32_0 = arith.constant 0 : i32
    %c0_i32_1 = arith.constant 0 : i32
    return %c0_i32, %c0_i32_0 : i32, i32
  }
  func.func @transform_4(%arg0: i32) -> (i32, i32) {
    %c0_i32 = arith.constant 0 : i32
    %c0_i32_0 = arith.constant 0 : i32
    %c0_i32_1 = arith.constant 0 : i32
    return %c0_i32, %c0_i32_0 : i32, i32
  }
  func.func @transform_5(%arg0: i32) -> (i32, i32, i32) {
    %c0_i32 = arith.constant 0 : i32
    %c0_i32_0 = arith.constant 0 : i32
    %c0_i32_1 = arith.constant 0 : i32
    %c0_i32_2 = arith.constant 0 : i32
    return %c0_i32, %c0_i32_0, %c0_i32_1 : i32, i32, i32
  }
}

</mosaic_0001>

<bundles_post_ra>
// kernel: tpu_custom_call.1
= control target key start
LH: loop header
LB: loop body
LE: loop exit
PB: predicated region body
PF: predicated region fallthrough
CT: control target
= control target key end

     0   :  { %10 = vsyncpa [#allocation3], 0  ;;  %s2534_s0 = inlined_call_operand.hbm [shape: f32[2,8,32], index: 0, kind: input, shape index: {}]   ;;  %s2535_s1 = inlined_call_operand.hbm [shape: f32[32,64], index: 1, kind: input, shape index: {}]   ;;  %s2536_s2 = inlined_call_operand.hbm [shape: f32[32,32], index: 2, kind: input, shape index: {}]   ;;  %s2537_s3 = inlined_call_operand.vmem [shape: f32[8,8], index: 3, kind: input, shape index: {}]   ;;  %s2538_s4 = inlined_call_operand.hbm [shape: f32[8,8], index: 4, kind: input, shape index: {}]   ;;  %s2539_s5 = inlined_call_operand.hbm [shape: f32[2,8,32], index: 5, kind: output, shape index: {}]  }
   0x1   :  { %11 = vsyncpa [#allocation6], 0 }
   0x2   :  { %12 = vsyncpa [#allocation9], 0 }
   0x3   :  { %13 = vsyncpa [#allocation4], 0  ;;  %s2150_s18 = smov [#allocation5]   ;;  %s2151_s20 = smov [#allocation2]  }
   0x4   :  { %s31_s19 = sshll.u32 %s2150_s18, 4  ;;  %s19_s21 = sshll.u32 %s2151_s20, 4  ;;  %s32_s19 = int_to_ptr.vmem [resolvable:$true] %s31_s19  ;;  %s2201_s21 = int_to_ptr.vmem [resolvable:$true] %s19_s21 }
   0x5   :  { %s2032_s24 = scalar_lea.hbm %s2535_s1, 512 }
   0x6   :  { %p2033_p0 = scmp.ne.s32.totalorder %s2535_s1, %s2032_s24  ;;  %p2036_p1 = scmp.lt.u32.totalorder %s2032_s24, %s2535_s1 }
   0x8   :  { %p2038_p2 = pnand %p2036_p1, %p2033_p0 }
   0xa   :  { %2041 = shalt.err (!%p2038_p2)
}
   0xb   :  { %s2042_s29 = scalar_lea.vmem %s32_s19, 512  ;;  %p2047_p4 = scmp.lt.s32.totalorder %s32_s19, %s32_s19 }
   0xc   :  { %p2043_p3 = scmp.ne.s32.totalorder %s32_s19, %s2042_s29  ;;  %p2048_p5 = scmp.lt.s32.totalorder %s2042_s29, %s2042_s29 }
   0xe   :  { %p2049_p6 = por %p2048_p5, %p2047_p4 }
  0x10   :  { %p2050_p7 = pnand %p2049_p6, %p2043_p3 }
  0x12   :  { %2053 = shalt.err (!%p2050_p7)
}
  0x13   :  { %s2152_s30 = smov 128   ;;  %s2153_s6 = smov 8  }
  0x14   :  { %37 = dma.hbm_to_vmem [thread:$0]  %s2535_s1, 512, %s32_s19, [#allocation6], %s2152_s30, %s2152_s30, %s2153_s6  }
  0x15   :  { %s2054_s11 = scalar_lea.hbm %s2534_s0, 256 }
  0x16   :  { %p2055_p8 = scmp.ne.s32.totalorder %s2534_s0, %s2054_s11  ;;  %p2058_p9 = scmp.lt.u32.totalorder %s2054_s11, %s2534_s0 }
  0x18   :  { %p2060_p10 = pnand %p2058_p9, %p2055_p8 }
  0x1a   :  { %2063 = shalt.err (!%p2060_p10)
}
  0x1b   :  { %s2064_s16 = scalar_lea.vmem %s2201_s21, 256  ;;  %p2069_p12 = scmp.lt.s32.totalorder %s2201_s21, %s2201_s21 }
  0x1c   :  { %p2065_p11 = scmp.ne.s32.totalorder %s2201_s21, %s2064_s16  ;;  %p2070_p13 = scmp.lt.s32.totalorder %s2064_s16, %s2064_s16 }
  0x1e   :  { %p2071_p0 = por %p2070_p13, %p2069_p12 }
  0x20   :  { %p2072_p1 = pnand %p2071_p0, %p2065_p11 }
  0x22   :  { %2075 = shalt.err (!%p2072_p1)
}
  0x23   :  { %25 = dma.hbm_to_vmem [thread:$0]  %s2534_s0, 256, %s2201_s21, [#allocation3], %s2152_s30, %s2152_s30, %s2153_s6  }
  0x24   :  { %s2154_s18 = smov [#allocation7]   ;;  %s2155_s20 = smov [#allocation8]  }
  0x25   :  { %s43_s19 = sshll.u32 %s2154_s18, 4  ;;  %s58_s22 = sshll.u32 %s2155_s20, 4  ;;  %s44_s19 = int_to_ptr.vmem [resolvable:$true] %s43_s19  ;;  %s59_s22 = int_to_ptr.vmem [resolvable:$true] %s58_s22 }
  0x26   :  { %s2076_s25 = scalar_lea.hbm %s2536_s2, 512 }
  0x27   :  { %p2077_p2 = scmp.ne.s32.totalorder %s2536_s2, %s2076_s25  ;;  %p2080_p3 = scmp.lt.u32.totalorder %s2076_s25, %s2536_s2 }
  0x29   :  { %p2082_p4 = pnand %p2080_p3, %p2077_p2 }
  0x2b   :  { %2085 = shalt.err (!%p2082_p4)
}
  0x2c   :  { %s2086_s0 = scalar_lea.vmem %s44_s19, 512  ;;  %p2091_p6 = scmp.lt.s32.totalorder %s44_s19, %s44_s19 }
  0x2d   :  { %p2087_p5 = scmp.ne.s32.totalorder %s44_s19, %s2086_s0  ;;  %p2092_p7 = scmp.lt.s32.totalorder %s2086_s0, %s2086_s0 }
  0x2f   :  { %p2093_p8 = por %p2092_p7, %p2091_p6 }
  0x31   :  { %p2094_p9 = pnand %p2093_p8, %p2087_p5 }
  0x33   :  { %2097 = shalt.err (!%p2094_p9)
}
  0x34   :  { %49 = dma.hbm_to_vmem [thread:$0]  %s2536_s2, 512, %s44_s19, [#allocation6], %s2152_s30, %s2152_s30, %s2153_s6  }
  0x35   :  { %s2098_s10 = scalar_lea.hbm %s2538_s4, 128 }
  0x36   :  { %p2099_p10 = scmp.ne.s32.totalorder %s2538_s4, %s2098_s10  ;;  %p2102_p11 = scmp.lt.u32.totalorder %s2098_s10, %s2538_s4 }
  0x38   :  { %p2104_p12 = pnand %p2102_p11, %p2099_p10 }
  0x3a   :  { %2107 = shalt.err (!%p2104_p12)
}
  0x3b   :  { %s2108_s15 = scalar_lea.vmem %s59_s22, 128  ;;  %p2113_p0 = scmp.lt.s32.totalorder %s59_s22, %s59_s22 }
  0x3c   :  { %p2109_p13 = scmp.ne.s32.totalorder %s59_s22, %s2108_s15  ;;  %p2114_p1 = scmp.lt.s32.totalorder %s2108_s15, %s2108_s15 }
  0x3e   :  { %p2115_p2 = por %p2114_p1, %p2113_p0 }
  0x40   :  { %p2116_p3 = pnand %p2115_p2, %p2109_p13 }
  0x42   :  { %2119 = shalt.err (!%p2116_p3)
}
  0x43   :  { %61 = dma.hbm_to_vmem [thread:$0]  %s2538_s4, 128, %s59_s22, [#allocation9]  }
  0x44   :  { %2142 = dma.done.wait [#allocation3], 256  }
  0x45   :  { %2143 = vsyncadd [#allocation3], 4294967040 }
  0x46   :  { %2144 = dma.done.wait [#allocation6], 1024  }
  0x47   :  { %2145 = vsyncadd [#allocation6], 4294966272 }
  0x48   :  { %2146 = dma.done.wait [#allocation9], 128  }
  0x49   :  { %2147 = vsyncadd [#allocation9], 4294967168  ;;  %vm80_vm0 = vcmask 261120   ;;  %v76_v0 = vld [vmem:[#allocation5] sm:$0xff]  ;;  %v77_v1 = vld [vmem:[#allocation5 + $0x8] sm:$0xff]  ;;  %s2156_s4 = smov 100  }
  0x4a   :  { %v78_v2 = vld [vmem:[#allocation5 + $0x10] sm:$0xff]  ;;  %v1963_v3 = vpack.c.bf16 %v77_v1, %v76_v0  ;;  %v79_v4 = vld [vmem:[#allocation5 + $0x18] sm:$0xff]  ;;  %s2157_s1 = smov 120   ;;  %s2158_s17 = smov 92   ;;  %vm248_vm1 = vcmask 31744   ;;  %v2281_v15 = vld [vmem:[#allocation8] sm:$0xff] }
  0x4b   :  { %v74_v5 = vld [vmem:[#allocation2] sm:$0xff]  ;;  %v1967_v6 = vpack.c.bf16 %v79_v4, %v78_v2  ;;  %v75_v7 = vld [vmem:[#allocation2 + $0x8] sm:$0xff]  ;;  %s2159_s18 = smov 32   ;;  %s2160_s22 = smov 112   ;;  %v2163_v34 = vmov 0.0   ;;  %vm2165_vm2 = vmmov 0  }
  0x4c   :  { %1869 = vmatprep.mubr.msk.f32.mxu0 %vm80_vm0, %v74_v5  ;;  %1964 = vmatprep.subr.bf16.mxu0 %v1963_v3  ;;  %v2293_v24 = vld [vmem:[%s2537_s3] sm:$0xff]  ;;  %s2161_s3 = smov 104   ;;  %s2162_s23 = smov 124   ;;  %vm344_vm3 = vcmask 64512   ;;  %vm1664_vm5 = vcmask 130048   ;;  %vm1666_vm6 = vcmask 195584  }
  0x4d   :  { %1966 = vmatpush3.bf16.msra.mxu0 %v1963_v3  ;;  %1872 = vmatprep.subr.mxu1 %v2163_v34  ;;  %s2164_s24 = smov 4   ;;  %s2166_s25 = smov 96  }
  0x4e   :  { %1968 = vmatprep.subr.bf16.mxu0 %v1967_v6  ;;  %1874 = vmatprep.mubr.msk.f32.mxu1 %vm2165_vm2, %v2163_v34  ;;  %s2167_s26 = smov 80   ;;  %s2168_s27 = smov 16  }
  0x4f   :  { %s2169_s28 = smov 24   ;;  %s2170_s29 = smov [#allocation10]  }
  0x50   :  { %s1775_s0 = sshll.u32 %s2170_s29, 4  ;;  %s1776_s0 = int_to_ptr.vmem [resolvable:$true] %s1775_s0 }
  0x51   :  { %1970 = vmatpush3.bf16.msra.mxu0 %v1967_v6  ;;  %s2120_s21 = scalar_lea.vmem %s1776_s0, 256  ;;  %p2125_p5 = scmp.lt.s32.totalorder %s1776_s0, %s1776_s0 }
  0x52   :  { %1892 = vmatprep.subr.mxu0 %v2163_v34  ;;  %p2121_p4 = scmp.ne.s32.totalorder %s1776_s0, %s2120_s21  ;;  %p2126_p6 = scmp.lt.s32.totalorder %s2120_s21, %s2120_s21 }
  0x54   :  { %1870 = vmatmul.mubr.msk.f32.vlgmr.msra.gmra.mrb[0].mxu0 %vm80_vm0, %v75_v7  ;;  %p2127_p7 = por %p2126_p6, %p2125_p5 }
  0x55   :  { %1894 = vmatprep.mubr.msk.f32.mxu0 %vm2165_vm2, %v2163_v34 }
  0x56   :  { %p2128_p8 = pnand %p2127_p7, %p2121_p4 }
 0x127   :  { %v2267_v8 = vpop.f32.mrb[0].mxu0 }
 0x128   :  { %v2269_v9 = vpop.f32.mrb[1].mxu0  ;;  %v185_v11 = vsub.f32 0.0, %v2267_v8 }
 0x129   :  { %293 = vrot.lane.b32.xlu1 %v2269_v9, %s2156_s4  ;;  %164 = vrot.lane.b32.xlu0 %v2269_v9, %s2157_s1  ;;  %v184_v10 = vsub.f32 0.0, %v2269_v9  ;;  %v257_v2 = vmul.f32 %v2293_v24, %v2269_v9 }
 0x12d   :  { %166 = vrot.lane.b32.xlu0 %v2267_v8, %s2157_s1  ;;  %281 = vrot.lane.b32.xlu1 %v184_v10, %s2158_s17 }
 0x131   :  { %283 = vrot.lane.b32.xlu0 %v185_v11, %s2158_s17  ;;  %295 = vrot.lane.b32.xlu1 %v2267_v8, %s2156_s4 }
 0x19b   :  { %v294_v12 = vpop.permute.xlu1 %293  ;;  %v2277_v13 = vpop.permute.xlu0 %164 }
 0x19c   :  { %297 = vrot.lane.b32.xlu1 %v2277_v13, %s2156_s4  ;;  %v186_v14 = vsub.f32 0.0, %v2277_v13 }
 0x19e   :  { %285 = vrot.lane.b32.xlu0 %v186_v14, %s2158_s17 }
 0x19f   :  { %v2283_v16 = vpop.permute.xlu0 %166  ;;  %v282_v17 = vpop.permute.xlu1 %281 }
 0x1a0   :  { %v305_v18 = vsel %vm248_vm1, %v282_v17, %v294_v12  ;;  %299 = vrot.lane.b32.xlu1 %v2283_v16, %s2156_s4  ;;  %v187_v19 = vsub.f32 0.0, %v2283_v16  ;;  %v259_v17 = vmul.f32 %v2293_v24, %v2277_v13 }
 0x1a1   :  { %v317_v20 = vmul.f32 %v305_v18, %v2281_v15 }
 0x1a2   :  { %287 = vrot.lane.b32.xlu0 %v187_v19, %s2158_s17 }
 0x1a3   :  { %v284_v21 = vpop.permute.xlu0 %283  ;;  %v296_v22 = vpop.permute.xlu1 %295 }
 0x1a4   :  { %325 = vrot.lane.b32.xlu1 %v317_v20, %s2159_s18  ;;  %v306_v23 = vsel %vm248_vm1, %v284_v21, %v296_v22 }
 0x1a5   :  { %v318_v25 = vmul.f32 %v306_v23, %v2281_v15 }
 0x1a6   :  { %310 = vrot.lane.b32.xlu0 %v2293_v24, %s2159_s18 }
 0x1a8   :  { %170 = vrot.lane.b32.xlu1 %v2269_v9, %s2160_s22 }
 0x1aa   :  { %327 = vrot.lane.b32.xlu0 %v318_v25, %s2159_s18 }
 0x1ae   :  { %172 = vrot.lane.b32.xlu0 %v2267_v8, %s2160_s22 }
 0x20e   :  { %v298_v26 = vpop.permute.xlu1 %297 }
 0x210   :  { %v286_v27 = vpop.permute.xlu0 %285 }
 0x211   :  { %v307_v28 = vsel %vm248_vm1, %v286_v27, %v298_v26 }
 0x212   :  { %v319_v29 = vmul.f32 %v307_v28, %v2281_v15  ;;  %v300_v30 = vpop.permute.xlu1 %299 }
 0x214   :  { %v288_v31 = vpop.permute.xlu0 %287  ;;  %329 = vrot.lane.b32.xlu1 %v319_v29, %s2159_s18 }
 0x215   :  { %v308_v32 = vsel %vm248_vm1, %v288_v31, %v300_v30 }
 0x216   :  { %v320_v33 = vmul.f32 %v308_v32, %v2281_v15  ;;  %v326_v36 = vpop.permute.xlu1 %325 }
 0x218   :  { %176 = vrot.lane.b32.xlu1 %v2269_v9, %s2161_s3  ;;  %331 = vrot.lane.b32.xlu0 %v320_v33, %s2159_s18  ;;  %v311_v35 = vpop.permute.xlu0 %310 }
 0x219   :  { %v313_v37 = vmul.f32 %v311_v35, %v2269_v9  ;;  %v314_v41 = vmul.f32 %v2267_v8, %v311_v35  ;;  %v316_v49 = vmul.f32 %v311_v35, %v2283_v16  ;;  %v315_v51 = vmul.f32 %v311_v35, %v2277_v13 }
 0x21a   :  { %v2322_v40 = vpop.permute.xlu1 %170 }
 0x21b   :  { %v337_v39 = vadd.f32 %v326_v36, %v313_v37  ;;  %v188_v42 = vsub.f32 0.0, %v2322_v40  ;;  %v261_v36 = vmul.f32 %v2293_v24, %v2322_v40 }
 0x21c   :  { %200 = vrot.lane.b32.xlu1 %v184_v10, %s2162_s23  ;;  %178 = vrot.lane.b32.xlu0 %v2267_v8, %s2161_s3  ;;  %v328_v38 = vpop.permute.xlu0 %327  ;;  %v258_v10 = vmul.f32 %v2267_v8, %v2293_v24 }
 0x21d   :  { %v338_v43 = vadd.f32 %v328_v38, %v314_v41 }
 0x220   :  { %226 = vrot.lane.b32.xlu1 %v2267_v8, %s2164_s24  ;;  %224 = vrot.lane.b32.xlu0 %v2269_v9, %s2164_s24  ;;  %v2328_v44 = vpop.permute.xlu0 %172 }
 0x221   :  { %v189_v45 = vsub.f32 0.0, %v2328_v44  ;;  %v262_v31 = vmul.f32 %v2293_v24, %v2328_v44 }
 0x224   :  { %204 = vrot.lane.b32.xlu1 %v186_v14, %s2162_s23  ;;  %202 = vrot.lane.b32.xlu0 %v185_v11, %s2162_s23 }
 0x228   :  { %206 = vrot.lane.b32.xlu1 %v187_v19, %s2162_s23  ;;  %228 = vrot.lane.b32.xlu0 %v2277_v13, %s2164_s24  ;;  %v260_v19 = vmul.f32 %v2293_v24, %v2283_v16 }
 0x22c   :  { %230 = vrot.lane.b32.xlu0 %v2283_v16, %s2164_s24  ;;  %342 = vrot.lane.b32.xlu1 %v337_v39, %s2166_s25 }
 0x230   :  { %421 = vrot.lane.b32.xlu0 %v338_v43, %s2166_s25  ;;  %208 = vrot.lane.b32.xlu1 %v188_v42, %s2162_s23 }
 0x234   :  { %210 = vrot.lane.b32.xlu1 %v189_v45, %s2162_s23  ;;  %232 = vrot.lane.b32.xlu0 %v2322_v40, %s2164_s24 }
 0x238   :  { %234 = vrot.lane.b32.xlu0 %v2328_v44, %s2164_s24 }
 0x286   :  { %v330_v46 = vpop.permute.xlu1 %329 }
 0x287   :  { %v339_v55 = vadd.f32 %v330_v46, %v315_v51 }
 0x28a   :  { %v332_v47 = vpop.permute.xlu0 %331  ;;  %v2337_v48 = vpop.permute.xlu1 %176 }
 0x28b   :  { %v190_v50 = vsub.f32 0.0, %v2337_v48  ;;  %236 = vrot.lane.b32.xlu0 %v2337_v48, %s2164_s24  ;;  %v340_v52 = vadd.f32 %v332_v47, %v316_v49  ;;  %v263_v40 = vmul.f32 %v2293_v24, %v2337_v48 }
 0x28d   :  { %212 = vrot.lane.b32.xlu1 %v190_v50, %s2162_s23 }
 0x28e   :  { %v2345_v53 = vpop.permute.xlu0 %178  ;;  %v201_v54 = vpop.permute.xlu1 %200 }
 0x28f   :  { %723 = vrot.lane.b32.xlu0 %v340_v52, %s2166_s25  ;;  %v191_v58 = vsub.f32 0.0, %v2345_v53  ;;  %v264_v45 = vmul.f32 %v2293_v24, %v2345_v53 }
 0x291   :  { %645 = vrot.lane.b32.xlu1 %v339_v55, %s2166_s25 }
 0x292   :  { %v225_v56 = vpop.permute.xlu0 %224  ;;  %v227_v57 = vpop.permute.xlu1 %226 }
 0x293   :  { %238 = vrot.lane.b32.xlu0 %v2345_v53, %s2164_s24  ;;  %v249_v61 = vsel %vm248_vm1, %v201_v54, %v225_v56 }
 0x294   :  { %v265_v0 = vmul.f32 %v249_v61, %v2281_v15 }
 0x295   :  { %214 = vrot.lane.b32.xlu1 %v191_v58, %s2162_s23 }
 0x296   :  { %v203_v59 = vpop.permute.xlu0 %202  ;;  %v205_v60 = vpop.permute.xlu1 %204  ;;  %v273_v5 = vadd.f32 %v265_v0, %v257_v2 }
 0x297   :  { %1039 = vrot.lane.b32.xlu0 %v2269_v9, %s2167_s26  ;;  %v250_v1 = vsel %vm248_vm1, %v203_v59, %v227_v57 }
 0x298   :  { %v266_v6 = vmul.f32 %v250_v1, %v2281_v15 }
 0x299   :  { %1115 = vrot.lane.b32.xlu1 %v2267_v8, %s2167_s26 }
 0x29a   :  { %v229_v62 = vpop.permute.xlu0 %228  ;;  %v207_v63 = vpop.permute.xlu1 %206  ;;  %v274_v9 = vadd.f32 %v266_v6, %v258_v10 }
 0x29b   :  { %v251_v7 = vsel %vm248_vm1, %v205_v60, %v229_v62 }
 0x29c   :  { %v267_v12 = vmul.f32 %v251_v7, %v2281_v15 }
 0x29e   :  { %v231_v3 = vpop.permute.xlu0 %230  ;;  %v343_v4 = vpop.permute.xlu1 %342  ;;  %v275_v8 = vadd.f32 %v267_v12, %v259_v17 }
 0x29f   :  { %1873 = vmatpush3.xpose.msk.msra.mxu1 %vm344_vm3, %v343_v4  ;;  %v252_v14 = vsel %vm248_vm1, %v207_v63, %v231_v3 }
 0x2a0   :  { %1877 = vmatprep.subr.mxu1 %v2163_v34  ;;  %v268_v18 = vmul.f32 %v252_v14, %v2281_v15 }
 0x2a2   :  { %v422_v11 = vpop.permute.xlu0 %421  ;;  %1875 = vmatmul.mubr.msk.f32.vlgmr.msra.gmra.mrb[0].mxu1 %vm344_vm3, %v273_v5  ;;  %v276_v20 = vadd.f32 %v268_v18, %v260_v19  ;;  %v209_v22 = vpop.permute.xlu1 %208 }
 0x2a3   :  { %1878 = vmatpush3.xpose.msk.msra.mxu1 %vm344_vm3, %v422_v11  ;;  %1879 = vmatprep.mubr.msk.f32.mxu1 %vm2165_vm2, %v2163_v34 }
 0x2a4   :  { %1882 = vmatprep.subr.mxu1 %v2163_v34 }
 0x2a6   :  { %1880 = vmatmul.mubr.msk.f32.vlgmr.msra.gmra.mrb[2].mxu1 %vm344_vm3, %v274_v9  ;;  %v233_v21 = vpop.permute.xlu0 %232  ;;  %v211_v25 = vpop.permute.xlu1 %210 }
 0x2a7   :  { %1883 = vmatpush3.xpose.msk.msra.mxu1 %vm344_vm3, %v343_v4  ;;  %1884 = vmatprep.mubr.msk.f32.mxu1 %vm2165_vm2, %v2163_v34  ;;  %v253_v28 = vsel %vm248_vm1, %v209_v22, %v233_v21 }
 0x2a8   :  { %1887 = vmatprep.subr.mxu1 %v2163_v34  ;;  %v269_v32 = vmul.f32 %v253_v28, %v2281_v15 }
 0x2aa   :  { %1885 = vmatmul.mubr.msk.f32.vlgmr.msra.gmra.mrb[4].mxu1 %vm344_vm3, %v275_v8  ;;  %v235_v23 = vpop.permute.xlu0 %234  ;;  %v277_v39 = vadd.f32 %v269_v32, %v261_v36 }
 0x2ab   :  { %1888 = vmatpush3.xpose.msk.msra.mxu1 %vm344_vm3, %v422_v11  ;;  %1889 = vmatprep.mubr.msk.f32.mxu1 %vm2165_vm2, %v2163_v34  ;;  %v254_v26 = vsel %vm248_vm1, %v211_v25, %v235_v23 }
 0x2ac   :  { %1897 = vmatprep.subr.mxu1 %v2163_v34  ;;  %v270_v29 = vmul.f32 %v254_v26, %v2281_v15 }
 0x2ae   :  { %1890 = vmatmul.mubr.msk.f32.vlgmr.msra.gmra.mrb[6].mxu1 %vm344_vm3, %v276_v20  ;;  %v278_v37 = vadd.f32 %v270_v29, %v262_v31 }
 0x2af   :  { %1899 = vmatprep.mubr.msk.f32.mxu1 %vm2165_vm2, %v2163_v34 }
 0x2fd   :  { %v237_v27 = vpop.permute.xlu0 %236 }
 0x2ff   :  { %v213_v30 = vpop.permute.xlu1 %212 }
 0x300   :  { %v255_v35 = vsel %vm248_vm1, %v213_v30, %v237_v27 }
 0x301   :  { %v724_v33 = vpop.permute.xlu0 %723  ;;  %v271_v41 = vmul.f32 %v255_v35, %v2281_v15 }
 0x302   :  { %1898 = vmatpush3.xpose.msk.msra.mxu1 %vm344_vm3, %v724_v33 }
 0x303   :  { %v646_v38 = vpop.permute.xlu1 %645  ;;  %1907 = vmatprep.subr.mxu1 %v2163_v34  ;;  %v279_v46 = vadd.f32 %v271_v41, %v263_v40 }
 0x304   :  { %1893 = vmatpush3.xpose.msk.msra.mxu0 %vm344_vm3, %v646_v38 }
 0x305   :  { %v239_v42 = vpop.permute.xlu0 %238  ;;  %1900 = vmatmul.mubr.msk.f32.vlgmr.msra.gmra.mrb[8].mxu1 %vm344_vm3, %v278_v37  ;;  %1902 = vmatprep.subr.mxu0 %v2163_v34 }
 0x306   :  { %1908 = vmatpush3.xpose.msk.msra.mxu1 %vm344_vm3, %v724_v33  ;;  %1909 = vmatprep.mubr.msk.f32.mxu1 %vm2165_vm2, %v2163_v34 }
 0x307   :  { %1895 = vmatmul.mubr.msk.f32.vlgmr.msra.gmra.mrb[2].mxu0 %vm344_vm3, %v277_v39  ;;  %v215_v43 = vpop.permute.xlu1 %214  ;;  %1917 = vmatprep.subr.mxu1 %v2163_v34 }
 0x308   :  { %v256_v44 = vsel %vm248_vm1, %v215_v43, %v239_v42  ;;  %1903 = vmatpush3.xpose.msk.msra.mxu0 %vm344_vm3, %v646_v38  ;;  %1904 = vmatprep.mubr.msk.f32.mxu0 %vm2165_vm2, %v2163_v34 }
 0x309   :  { %v272_v47 = vmul.f32 %v256_v44, %v2281_v15  ;;  %1912 = vmatprep.subr.mxu0 %v2163_v34  ;;  %v2421_v49 = vpop.permute.xlu0 %1039  ;;  %v954_v15 = vlaneseq }
 0x30b   :  { %v280_v48 = vadd.f32 %v272_v47, %v264_v45  ;;  %1905 = vmatmul.mubr.msk.f32.vlgmr.msra.gmra.mrb[4].mxu0 %vm344_vm3, %v279_v46  ;;  %v2424_v50 = vpop.permute.xlu1 %1115  ;;  %v955_v24 = vshrl.u32 %v954_v15, 7  ;;  %v957_v51 = vand.u32 127, %v954_v15 }
 0x30c   :  { %1913 = vmatpush3.msra.mxu0 %v2421_v49  ;;  %1914 = vmatprep.mubr.msk.f32.mxu0 %vm2165_vm2, %v2163_v34 }
 0x30d   :  { %1910 = vmatmul.mubr.msk.f32.vlgmr.msra.gmra.mrb[10].mxu1 %vm344_vm3, %v280_v48  ;;  %1922 = vmatprep.subr.mxu0 %v2163_v34  ;;  %vm2435_vm4 = vcmp.ge.s32.totalorder %v955_v24, %v957_v51 }
 0x30e   :  { %1918 = vmatpush3.msra.mxu1 %v2424_v50  ;;  %1919 = vmatprep.mubr.msk.f32.mxu1 %vm2165_vm2, %v2163_v34 }
 0x30f   :  { %1927 = vmatprep.subr.mxu1 %v2163_v34 }
 0x375   :  { %v416_v52 = vpop.f32.mrb[0].mxu1 }
 0x376   :  { %v946_v54 = vmul.f32 0.35355338, %v416_v52  ;;  %v1876_v55 = vpop.f32.mrb[1].mxu1 }
 0x378   :  { %v959_v56 = vsel %vm2435_vm4, %v946_v54, -1e+30 }
 0x379   :  { %v494_v57 = vpop.f32.mrb[2].mxu1  ;;  %v967_v58 = vsel %vm344_vm3, %v959_v56, -inf }
 0x37a   :  { %v947_v59 = vmul.f32 0.35355338, %v494_v57  ;;  %968 = vmax.xlane.f32.xlu1 %v967_v58  ;;  %v1881_v60 = vpop.f32.mrb[3].mxu1 }
 0x37c   :  { %v960_v61 = vsel %vm2435_vm4, %v947_v59, -1e+30 }
 0x37d   :  { %v567_v62 = vpop.f32.mrb[4].mxu1  ;;  %v970_v63 = vsel %vm344_vm3, %v960_v61, -inf }
 0x37e   :  { %v948_v0 = vmul.f32 0.35355338, %v567_v62  ;;  %971 = vmax.xlane.f32.xlu0 %v970_v63  ;;  %v1886_v1 = vpop.f32.mrb[5].mxu1 }
 0x380   :  { %v961_v2 = vsel %vm2435_vm4, %v948_v0, -1e+30 }
 0x381   :  { %v640_v3 = vpop.f32.mrb[6].mxu1  ;;  %v973_v4 = vsel %vm344_vm3, %v961_v2, -inf }
 0x382   :  { %v949_v5 = vmul.f32 0.35355338, %v640_v3  ;;  %974 = vmax.xlane.f32.xlu0 %v973_v4  ;;  %v1891_v6 = vpop.f32.mrb[7].mxu1 }
 0x384   :  { %v962_v7 = vsel %vm2435_vm4, %v949_v5, -1e+30 }
 0x385   :  { %v976_v10 = vsel %vm344_vm3, %v962_v7, -inf }
 0x386   :  { %977 = vmax.xlane.f32.xlu1 %v976_v10 }
 0x3d8   :  { %v796_v11 = vpop.f32.mrb[8].mxu1 }
 0x3d9   :  { %v951_v9 = vmul.f32 0.35355338, %v796_v11  ;;  %v1901_v12 = vpop.f32.mrb[9].mxu1 }
 0x3da   :  { %v718_v14 = vpop.f32.mrb[2].mxu0 }
 0x3db   :  { %v950_v17 = vmul.f32 0.35355338, %v718_v14  ;;  %v1896_v8 = vpop.f32.mrb[3].mxu0  ;;  %v964_v18 = vsel %vm2435_vm4, %v951_v9, -1e+30 }
 0x3dc   :  { %v982_v19 = vsel %vm344_vm3, %v964_v18, -inf }
 0x3dd   :  { %983 = vmax.xlane.f32.xlu1 %v982_v19  ;;  %v963_v20 = vsel %vm2435_vm4, %v950_v17, -1e+30 }
 0x3de   :  { %v869_v21 = vpop.f32.mrb[4].mxu0  ;;  %v979_v22 = vsel %vm344_vm3, %v963_v20, -inf }
 0x3df   :  { %v952_v23 = vmul.f32 0.35355338, %v869_v21  ;;  %980 = vmax.xlane.f32.xlu0 %v979_v22  ;;  %v1906_v25 = vpop.f32.mrb[5].mxu0 }
 0x3e0   :  { %v942_v26 = vpop.f32.mrb[10].mxu1 }
 0x3e1   :  { %v953_v27 = vmul.f32 0.35355338, %v942_v26  ;;  %v1911_v28 = vpop.f32.mrb[11].mxu1  ;;  %v965_v29 = vsel %vm2435_vm4, %v952_v23, -1e+30  ;;  %v1683_v26 = vld [vmem:[#allocation7] sm:$0xff] }
 0x3e2   :  { %v985_v30 = vsel %vm344_vm3, %v965_v29, -inf }
 0x3e3   :  { %986 = vmax.xlane.f32.xlu0 %v985_v30  ;;  %v966_v31 = vsel %vm2435_vm4, %v953_v27, -1e+30  ;;  %v1684_v27 = vld [vmem:[#allocation7 + $0x8] sm:$0xff] }
 0x3e4   :  { %v988_v32 = vsel %vm344_vm3, %v966_v31, -inf }
 0x3e5   :  { %989 = vmax.xlane.f32.xlu1 %v988_v32  ;;  %v1686_v32 = vld [vmem:[#allocation7 + $0x18] sm:$0xff] }
 0x3f6   :  { %1337 = vrot.lane.b32.xlu1 %v2277_v13, %s2167_s26 }
 0x3f9   :  { %1413 = vrot.lane.b32.xlu0 %v2283_v16, %s2167_s26 }
 0x407   :  { %v969_v33 = vpop.xlane.xlu1 %968 }
 0x408   :  { %v991_v35 = vsub.f32 %v959_v56, %v969_v33 }
 0x40a   :  { %v999_v36 = vmul.f32 1.442695, %v991_v35 }
 0x40b   :  { %v972_v37 = vpop.xlane.xlu0 %971 }
 0x40c   :  { %2000 = vpow2.f32 %v999_v36  ;;  %v992_v38 = vsub.f32 %v960_v61, %v972_v37 }
 0x40e   :  { %v1001_v39 = vmul.f32 1.442695, %v992_v38 }
 0x40f   :  { %v975_v41 = vpop.xlane.xlu0 %974 }
 0x410   :  { %2002 = vpow2.f32 %v1001_v39  ;;  %v993_v42 = vsub.f32 %v961_v2, %v975_v41 }
 0x412   :  { %v1003_v40 = vmul.f32 1.442695, %v993_v42 }
 0x413   :  { %v978_v43 = vpop.xlane.xlu1 %977 }
 0x414   :  { %2004 = vpow2.f32 %v1003_v40  ;;  %v994_v44 = vsub.f32 %v962_v7, %v978_v43 }
 0x416   :  { %v2467_v45 = vpop.eup %2000  ;;  %v1005_v13 = vmul.f32 1.442695, %v994_v44 }
 0x417   :  { %1915 = vmatmul.mubr.msk.f32.vlgmr.msra.gmra.mrb[6].mxu0 %vm344_vm3, %v2467_v45  ;;  %v1015_v6 = vsel %vm344_vm3, %v2467_v45, 0.0 }
 0x418   :  { %2006 = vpow2.f32 %v1005_v13  ;;  %1923 = vmatpush3.msra.mxu0 %v2421_v49  ;;  %1924 = vmatprep.mubr.msk.f32.mxu0 %vm2165_vm2, %v2163_v34 }
 0x419   :  { %1932 = vmatprep.subr.mxu0 %v2163_v34 }
 0x41a   :  { %v2003_v16 = vpop.eup %2002 }
 0x41b   :  { %1920 = vmatmul.mubr.msk.f32.vlgmr.msra.gmra.mrb[12].mxu1 %vm344_vm3, %v2003_v16  ;;  %v1018_v7 = vsel %vm344_vm3, %v2003_v16, 0.0 }
 0x41c   :  { %1928 = vmatpush3.msra.mxu1 %v2424_v50  ;;  %1929 = vmatprep.mubr.msk.f32.mxu1 %vm2165_vm2, %v2163_v34 }
 0x41d   :  { %1937 = vmatprep.subr.mxu1 %v2163_v34 }
 0x41e   :  { %v2005_v46 = vpop.eup %2004 }
 0x41f   :  { %1925 = vmatmul.mubr.msk.f32.vlgmr.msra.gmra.mrb[8].mxu0 %vm344_vm3, %v2005_v46  ;;  %v1021_v47 = vsel %vm344_vm3, %v2005_v46, 0.0 }
 0x420   :  { %1022 = vadd.xlane.f32.xlu1 %v1021_v47  ;;  %1934 = vmatprep.mubr.msk.f32.mxu0 %vm2165_vm2, %v2163_v34 }
 0x422   :  { %v2007_v48 = vpop.eup %2006 }
 0x423   :  { %1930 = vmatmul.mubr.msk.f32.vlgmr.msra.gmra.mrb[14].mxu1 %vm344_vm3, %v2007_v48  ;;  %v1024_v49 = vsel %vm344_vm3, %v2007_v48, 0.0 }
 0x424   :  { %1025 = vadd.xlane.f32.xlu0 %v1024_v49  ;;  %1939 = vmatprep.mubr.msk.f32.mxu1 %vm2165_vm2, %v2163_v34 }
 0x46a   :  { %v984_v50 = vpop.xlane.xlu1 %983 }
 0x46b   :  { %v996_v15 = vsub.f32 %v964_v18, %v984_v50 }
 0x46c   :  { %v981_v24 = vpop.xlane.xlu0 %980 }
 0x46d   :  { %v1009_v51 = vmul.f32 1.442695, %v996_v15  ;;  %v995_v52 = vsub.f32 %v963_v20, %v981_v24 }
 0x46f   :  { %2008 = vpow2.f32 %v1009_v51  ;;  %v1007_v53 = vmul.f32 1.442695, %v995_v52 }
 0x470   :  { %v987_v54 = vpop.xlane.xlu0 %986 }
 0x471   :  { %2010 = vpow2.f32 %v1007_v53  ;;  %v997_v55 = vsub.f32 %v965_v29, %v987_v54  ;;  %v1971_v29 = vpack.c.bf16 %v1684_v27, %v1683_v26 }
 0x472   :  { %v990_v56 = vpop.xlane.xlu1 %989 }
 0x473   :  { %v1011_v57 = vmul.f32 1.442695, %v997_v55  ;;  %v998_v58 = vsub.f32 %v966_v31, %v990_v56  ;;  %v1685_v31 = vld [vmem:[#allocation7 + $0x10] sm:$0xff] }
 0x474   :  { %v1414_v59 = vpop.permute.xlu0 %1413  ;;  %v1975_v33 = vpack.c.bf16 %v1686_v32, %v1685_v31 }
 0x475   :  { %2012 = vpow2.f32 %v1011_v57  ;;  %v1013_v60 = vmul.f32 1.442695, %v998_v58  ;;  %1938 = vmatpush3.msra.mxu1 %v1414_v59 }
 0x476   :  { %v1338_v61 = vpop.permute.xlu1 %1337  ;;  %1947 = vmatprep.subr.mxu1 %v2163_v34 }
 0x477   :  { %2014 = vpow2.f32 %v1013_v60  ;;  %1933 = vmatpush3.msra.mxu0 %v1338_v61 }
 0x478   :  { %1942 = vmatprep.subr.mxu0 %v2163_v34 }
 0x479   :  { %v2009_v62 = vpop.eup %2008 }
 0x47a   :  { %1940 = vmatmul.mubr.msk.f32.vlgmr.msra.gmra.mrb[16].mxu1 %vm344_vm3, %v2009_v62  ;;  %v1030_v63 = vsel %vm344_vm3, %v2009_v62, 0.0 }
 0x47b   :  { %v2011_v0 = vpop.eup %2010  ;;  %1948 = vmatpush3.msra.mxu1 %v1414_v59  ;;  %1031 = vadd.xlane.f32.xlu1 %v1030_v63 }
 0x47c   :  { %1935 = vmatmul.mubr.msk.f32.vlgmr.msra.gmra.mrb[10].mxu0 %vm344_vm3, %v2011_v0  ;;  %v1027_v1 = vsel %vm344_vm3, %v2011_v0, 0.0  ;;  %1949 = vmatprep.mubr.msk.f32.mxu1 %vm2165_vm2, %v2163_v34 }
 0x47d   :  { %1943 = vmatpush3.msra.mxu0 %v1338_v61  ;;  %1028 = vadd.xlane.f32.xlu0 %v1027_v1 }
 0x47e   :  { %1944 = vmatprep.mubr.msk.f32.mxu0 %vm2165_vm2, %v2163_v34  ;;  %1972 = vmatprep.subr.bf16.mxu0 %v1971_v29 }
 0x47f   :  { %v2013_v2 = vpop.eup %2012 }
 0x480   :  { %1945 = vmatmul.mubr.msk.f32.vlgmr.msra.gmra.mrb[12].mxu0 %vm344_vm3, %v2013_v2  ;;  %v1033_v3 = vsel %vm344_vm3, %v2013_v2, 0.0 }
 0x481   :  { %v2015_v4 = vpop.eup %2014  ;;  %1034 = vadd.xlane.f32.xlu0 %v1033_v3  ;;  %1974 = vmatpush3.bf16.msra.mxu0 %v1971_v29 }
 0x482   :  { %1950 = vmatmul.mubr.msk.f32.vlgmr.msra.gmra.mrb[18].mxu1 %vm344_vm3, %v2015_v4  ;;  %v1036_v5 = vsel %vm344_vm3, %v2015_v4, 0.0  ;;  %1976 = vmatprep.subr.bf16.mxu0 %v1975_v33 }
 0x483   :  { %1037 = vadd.xlane.f32.xlu1 %v1036_v5 }
 0x485   :  { %1016 = vadd.xlane.f32.xlu0 %v1015_v6  ;;  %1978 = vmatpush3.bf16.msra.mxu0 %v1975_v33 }
 0x487   :  { %1019 = vadd.xlane.f32.xlu1 %v1018_v7 }
 0x4ad   :  { %v1023_v34 = vpop.xlane.xlu1 %1022 }
 0x4ae   :  { %2016 = vrcp.f32 %v1023_v34 }
 0x4b1   :  { %v1026_v10 = vpop.xlane.xlu0 %1025 }
 0x4b2   :  { %2018 = vrcp.f32 %v1026_v10 }
 0x4b8   :  { %v2017_v17 = vpop.eup %2016 }
 0x4bc   :  { %v2019_v20 = vpop.eup %2018 }
 0x4ea   :  { %v2505_v11 = vpop.f32.mrb[6].mxu0 }
 0x4eb   :  { %v1916_v9 = vpop.f32.mrb[7].mxu0 }
 0x4ee   :  { %v2507_v12 = vpop.f32.mrb[12].mxu1 }
 0x4ef   :  { %v1921_v14 = vpop.f32.mrb[13].mxu1 }
 0x4f2   :  { %v1260_v8 = vpop.f32.mrb[8].mxu0 }
 0x4f3   :  { %v1640_v18 = vmul.f32 %v2017_v17, %v1260_v8  ;;  %v1926_v19 = vpop.f32.mrb[9].mxu0 }
 0x4f5   :  { %1652 = vrot.lane.b32.xlu0 %v1640_v18, %s2153_s6 }
 0x4f6   :  { %v1333_v21 = vpop.f32.mrb[14].mxu1 }
 0x4f7   :  { %v1642_v22 = vmul.f32 %v2019_v20, %v1333_v21  ;;  %v1931_v23 = vpop.f32.mrb[15].mxu1 }
 0x4f9   :  { %1669 = vrot.lane.b32.xlu1 %v1642_v22, %s2153_s6 }
 0x508   :  { %v1032_v28 = vpop.xlane.xlu1 %1031 }
 0x50a   :  { %v1029_v25 = vpop.xlane.xlu0 %1028 }
 0x50b   :  { %2020 = vrcp.f32 %v1029_v25 }
 0x50c   :  { %2022 = vrcp.f32 %v1032_v28 }
 0x50e   :  { %v1035_v30 = vpop.xlane.xlu0 %1034 }
 0x50f   :  { %2024 = vrcp.f32 %v1035_v30 }
 0x510   :  { %v1038_v35 = vpop.xlane.xlu1 %1037 }
 0x511   :  { %2026 = vrcp.f32 %v1038_v35 }
 0x512   :  { %v1017_v50 = vpop.xlane.xlu0 %1016 }
 0x513   :  { %2028 = vrcp.f32 %v1017_v50 }
 0x514   :  { %v1020_v15 = vpop.xlane.xlu1 %1019 }
 0x515   :  { %v2021_v38 = vpop.eup %2020  ;;  %2030 = vrcp.f32 %v1020_v15 }
 0x516   :  { %v2023_v40 = vpop.eup %2022 }
 0x519   :  { %v2025_v43 = vpop.eup %2024 }
 0x51b   :  { %v2027_v48 = vpop.eup %2026 }
 0x51d   :  { %v2029_v51 = vpop.eup %2028 }
 0x51e   :  { %v1636_v54 = vmul.f32 %v2029_v51, %v2505_v11 }
 0x51f   :  { %v2031_v55 = vpop.eup %2030 }
 0x520   :  { %v1638_v59 = vmul.f32 %v2031_v55, %v2507_v12 }
 0x54d   :  { %v1485_v36 = vpop.f32.mrb[16].mxu1 }
 0x54e   :  { %v1941_v37 = vpop.f32.mrb[17].mxu1  ;;  %v1646_v45 = vmul.f32 %v2023_v40, %v1485_v36 }
 0x54f   :  { %v1409_v39 = vpop.f32.mrb[10].mxu0 }
 0x550   :  { %v1644_v41 = vmul.f32 %v2021_v38, %v1409_v39  ;;  %v1936_v42 = vpop.f32.mrb[11].mxu0 }
 0x552   :  { %1656 = vrot.lane.b32.xlu1 %v1644_v41, %s2168_s27 }
 0x553   :  { %v1558_v44 = vpop.f32.mrb[12].mxu0 }
 0x554   :  { %v1648_v13 = vmul.f32 %v2025_v43, %v1558_v44  ;;  %v1946_v16 = vpop.f32.mrb[13].mxu0 }
 0x555   :  { %v1631_v46 = vpop.f32.mrb[18].mxu1 }
 0x556   :  { %v1951_v47 = vpop.f32.mrb[19].mxu1  ;;  %1660 = vrot.lane.b32.xlu0 %v1648_v13, %s2169_s28  ;;  %1673 = vrot.lane.b32.xlu1 %v1646_v45, %s2168_s27  ;;  %v1650_v49 = vmul.f32 %v2027_v48, %v1631_v46 }
 0x55a   :  { %1677 = vrot.lane.b32.xlu0 %v1650_v49, %s2169_s28 }
 0x567   :  { %v1653_v52 = vpop.permute.xlu0 %1652 }
 0x568   :  { %v1663_v56 = vsel %vm344_vm3, %v1636_v54, %v1653_v52 }
 0x56b   :  { %v1670_v24 = vpop.permute.xlu1 %1669 }
 0x56c   :  { %v1680_v62 = vsel %vm344_vm3, %v1638_v59, %v1670_v24 }
 0x5c4   :  { %v1657_v53 = vpop.permute.xlu1 %1656 }
 0x5c5   :  { %v1665_v57 = vsel %vm1664_vm5, %v1663_v56, %v1657_v53 }
 0x5c8   :  { %v1661_v58 = vpop.permute.xlu0 %1660  ;;  %v1674_v61 = vpop.permute.xlu1 %1673 }
 0x5c9   :  { %v1667_v60 = vsel %vm1666_vm6, %v1665_v57, %v1661_v58  ;;  %v1681_v63 = vsel %vm1664_vm5, %v1680_v62, %v1674_v61 }
 0x5ca   :  { %1960 = vmatprep.mubr.msk.f32.mxu0 %vm80_vm0, %v1667_v60 }
 0x5cc   :  { %v1678_v0 = vpop.permute.xlu0 %1677 }
 0x5cd   :  { %v1682_v1 = vsel %vm1666_vm6, %v1681_v63, %v1678_v0 }
 0x5ce   :  { %1961 = vmatmul.mubr.msk.f32.vlgmr.msra.gmra.mrb[14].mxu0 %vm80_vm0, %v1682_v1 }
 0x6a1   :  { %v1962_v2 = vpop.f32.mrb[14].mxu0 }
 0x6a2   :  { %1769 = vst.msk [vmem:[#allocation10 + $0x8] sm:$0xff] %vm80_vm0, %v1962_v2  ;;  %v1759_v3 = vpop.f32.mrb[15].mxu0 }
 0x6a3   :  { %1768 = vst.msk [vmem:[#allocation10] sm:$0xff] %vm80_vm0, %v1759_v3 }
 0x6a4   :  { %2131 = shalt.err (!%p2128_p8)
}
 0x6a5   :  { %s2132_s9 = scalar_lea.hbm %s2539_s5, 256 }
 0x6a6   :  { %p2133_p9 = scmp.ne.s32.totalorder %s2539_s5, %s2132_s9  ;;  %p2136_p10 = scmp.lt.u32.totalorder %s2132_s9, %s2539_s5 }
 0x6a8   :  { %p2138_p11 = pnand %p2136_p10, %p2133_p9 }
 0x6aa   :  { %2141 = shalt.err (!%p2138_p11)
}
 0x6ab   :  { %1781 = dma.vmem_to_hbm [thread:$0]  %s1776_s0, 256, %s2539_s5, [#allocation4], %s2152_s30, %s2152_s30, %s2153_s6  }
 0x6ac   :  { %2148 = dma.done.wait [#allocation4], 256  }
 0x6ad   :  { %2149 = vsyncadd [#allocation4], 4294967040 }
 0x6ae   :  { %1785 = vsyncpa [#allocation3], 1 }
 0x6af   :  { %1786 = vsyncpa [#allocation6], 1 }
 0x6b0   :  { %1787 = vsyncpa [#allocation9], 1 }
 0x6b1   :  { %1788 = vsyncpa [#allocation4], 1 }

</bundles_post_ra>
